<compile_context>
chip_gen: v5e
topology: v5e:2x2
jax: 0.10.0
libtpu: 0.0.40
codegen_flags: <defaults>
</compile_context>

<pallas_src>
import functools

import jax
import jax.numpy as jnp
from jax.experimental import pallas as pl
from jax.experimental.pallas import tpu as pltpu


def se_kernel(x_ref, w1t_ref, b1_ref, w2t_ref, b2_ref, o_ref, *, inv_hw):
    # x_ref:  (BN, C, HWp)   w1t_ref: (C, Cr)   b1_ref: (1, Cr)
    # w2t_ref:(Cr, C)        b2_ref:  (1, C)    o_ref:  (BN, C, HWp)
    x = x_ref[...]                                             # (BN, C, HWp)

    # Global average pool: sum over HW (padded tail is zero) * 1/HW, in f32.
    pooled = jnp.sum(x.astype(jnp.float32), axis=2) * inv_hw   # (BN, C)

    # fc1 (1x1 conv) + LeakyReLU (PyTorch default negative_slope = 0.01)
    h = jnp.dot(pooled, w1t_ref[...],
                preferred_element_type=jnp.float32) + b1_ref[...]  # (BN, Cr)
    h = jnp.where(h >= 0, h, 0.01 * h)

    # fc2 (1x1 conv) + sigmoid
    s = jnp.dot(h, w2t_ref[...],
                preferred_element_type=jnp.float32) + b2_ref[...]  # (BN, C)
    scale = jax.nn.sigmoid(s)                                      # (BN, C)

    # Broadcast multiply over the lane-dense HW axis.
    o_ref[...] = (x * scale[:, :, None]).astype(o_ref.dtype)


def _choose_bn(n, c, hwp, itemsize, vmem_budget_bytes=48 * 1024 * 1024):
    """Pick how many batch elements to process per grid step."""
    bn = max(1, min(n, 8))
    # Double-buffered input + double-buffered output slabs must fit the budget.
    while bn > 1 and 4 * bn * c * hwp * itemsize > vmem_budget_bytes:
        bn -= 1
    # Keep >= 2 grid steps when possible so v7x's 2 TensorCores both get work.
    while bn > 1 and pl.cdiv(n, bn) < 2:
        bn -= 1
    return bn


def se_module(x, w1, b1, w2, b2):
    """x: (N, C, H, W). w1: (Cr, C), b1: (Cr,), w2: (C, Cr), b2: (C,)."""
    N, C, H, W = x.shape
    Cr = w1.shape[0]
    HW = H * W
    itemsize = jnp.dtype(x.dtype).itemsize

    # --- layout plumbing: lane-dense last dim, BN-batched leading dim -------
    HWp = pl.cdiv(HW, 128) * 128
    x_flat = x.reshape(N, C, HW)
    if HWp != HW:
        # Zero padding: contributes nothing to the pooled sum; padded outputs
        # are sliced away below.
        x_flat = jnp.pad(x_flat, ((0, 0), (0, 0), (0, HWp - HW)))

    bn = _choose_bn(N, C, HWp, itemsize)
    Np = pl.cdiv(N, bn) * bn
    if Np != N:
        x_flat = jnp.pad(x_flat, ((0, Np - N), (0, 0), (0, 0)))
    grid_n = Np // bn

    # Row-oriented weights / biases (transposed once on the host side).
    w1t = jnp.asarray(w1).T            # (C, Cr)
    w2t = jnp.asarray(w2).T            # (Cr, C)
    b1_row = jnp.asarray(b1).reshape(1, Cr)
    b2_row = jnp.asarray(b2).reshape(1, C)

    # --- VMEM budget: 2x double-buffered (in + out) slabs + params + slack --
    slab_bytes = bn * C * HWp * itemsize
    param_bytes = (w1t.size + w2t.size + b1_row.size + b2_row.size) * 4
    vmem_limit = int(min(100 * 1024 * 1024,
                         max(32 * 1024 * 1024,
                             int(4 * slab_bytes * 1.5) + 2 * param_bytes + (1 << 20))))

    kernel = functools.partial(se_kernel, inv_hw=float(1.0 / HW))

    out_flat = pl.pallas_call(
        kernel,
        out_shape=jax.ShapeDtypeStruct((Np, C, HWp), x.dtype),
        grid_spec=pltpu.PrefetchScalarGridSpec(
            num_scalar_prefetch=0,
            grid=(grid_n,),
            in_specs=[
                pl.BlockSpec((bn, C, HWp), lambda b: (b, 0, 0)),
                pl.BlockSpec((C, Cr), lambda b: (0, 0)),
                pl.BlockSpec((1, Cr), lambda b: (0, 0)),
                pl.BlockSpec((Cr, C), lambda b: (0, 0)),
                pl.BlockSpec((1, C), lambda b: (0, 0)),
            ],
            out_specs=pl.BlockSpec((bn, C, HWp), lambda b: (b, 0, 0)),
        ),
        compiler_params=pltpu.CompilerParams(
            dimension_semantics=("parallel",),
            vmem_limit_bytes=vmem_limit),
    )(x_flat, w1t, b1_row, w2t, b2_row)

    # Drop batch / HW padding and restore NCHW.
    return out_flat[:N, :, :HW].reshape(N, C, H, W)


def se_reference(x, w1, b1, w2, b2):
    pooled = jnp.mean(x, axis=(2, 3))                      # (N, C)
    h = pooled @ w1.T + b1                                 # (N, Cr)
    h = jnp.where(h >= 0, h, 0.01 * h)                     # LeakyReLU(0.01)
    s = h @ w2.T + b2                                      # (N, C)
    scale = jax.nn.sigmoid(s)[:, :, None, None]            # (N, C, 1, 1)
    return x * scale


if __name__ == "__main__":
    # SEModule(channels=64, reduction=16) -> hidden = 4 channels
    N, C, H, W = 2, 64, 16, 16
    reduction = 16
    Cr = C // reduction

    key = jax.random.PRNGKey(0)
    kx, k1, k2, k3, k4 = jax.random.split(key, 5)

    x = jax.random.normal(kx, (N, C, H, W), dtype=jnp.float32)
    # fc1: Conv2d(C, Cr, 1)  -> weight (Cr, C), bias (Cr,)
    # fc2: Conv2d(Cr, C, 1)  -> weight (C, Cr), bias (C,)
    w1 = jax.random.normal(k1, (Cr, C), dtype=jnp.float32) * 0.1
    b1 = jax.random.normal(k2, (Cr,), dtype=jnp.float32) * 0.1
    w2 = jax.random.normal(k3, (C, Cr), dtype=jnp.float32) * 0.1
    b2 = jax.random.normal(k4, (C,), dtype=jnp.float32) * 0.1

    out = se_module(x, w1, b1, w2, b2)
    jax.block_until_ready(out)

    ref = se_reference(x, w1, b1, w2, b2)
    assert jnp.allclose(out, ref, atol=1e-5, rtol=1e-5), "mismatch vs reference"

    print("KERNEL_OK")
</pallas_src>

<mosaic_0001>
module attributes {stable_mosaic.version = 11 : i64} {
  func.func @se_kernel(%arg0: i32, %arg1: memref<1x64x256xf32, #tpu.memory_space<vmem>>, %arg2: memref<64x4xf32, #tpu.memory_space<vmem>>, %arg3: memref<1x4xf32, #tpu.memory_space<vmem>>, %arg4: memref<4x64xf32, #tpu.memory_space<vmem>>, %arg5: memref<1x64xf32, #tpu.memory_space<vmem>>, %arg6: memref<1x64x256xf32, #tpu.memory_space<vmem>>) attributes {dimension_semantics = [#tpu.dimension_semantics<parallel>], iteration_bounds = array<i64: 2>, scalar_prefetch = 0 : i64, scratch_operands = 0 : i64, tpu.core_type = #tpu.core_type<tc>, window_params = [{transform_indices = @transform_0, window_bounds = array<i64: 1, 64, 256>}, {pipeline_mode = #tpu.pipeline_mode<synchronous>, transform_indices = @transform_1, window_bounds = array<i64: 64, 4>}, {pipeline_mode = #tpu.pipeline_mode<synchronous>, transform_indices = @transform_2, window_bounds = array<i64: 1, 4>}, {pipeline_mode = #tpu.pipeline_mode<synchronous>, transform_indices = @transform_3, window_bounds = array<i64: 4, 64>}, {pipeline_mode = #tpu.pipeline_mode<synchronous>, transform_indices = @transform_4, window_bounds = array<i64: 1, 64>}, {transform_indices = @transform_5, window_bounds = array<i64: 1, 64, 256>}]} {
    %c0 = arith.constant 0 : index
    %c0_0 = arith.constant 0 : index
    %c0_1 = arith.constant 0 : index
    %0 = vector.load %arg1[%c0, %c0_0, %c0_1] : memref<1x64x256xf32, #tpu.memory_space<vmem>>, vector<1x64x256xf32>
    %cst = arith.constant dense<0.000000e+00> : vector<1x64xf32>
    %1 = vector.multi_reduction <add>, %0, %cst [2] : vector<1x64x256xf32> to vector<1x64xf32>
    %cst_2 = arith.constant 3.906250e-03 : f32
    %2 = vector.broadcast %cst_2 : f32 to vector<1x64xf32>
    %3 = arith.mulf %1, %2 : vector<1x64xf32>
    %c0_3 = arith.constant 0 : index
    %c0_4 = arith.constant 0 : index
    %4 = vector.load %arg2[%c0_3, %c0_4] : memref<64x4xf32, #tpu.memory_space<vmem>>, vector<64x4xf32>
    %cst_5 = arith.constant dense<0.000000e+00> : vector<1x4xf32>
    %5 = tpu.matmul %3, %4, %cst_5 {dimension_numbers = #tpu.dot_dimension_numbers<[1], [0], [0], [1], [0, 0, 1, 1], [], []>} : vector<1x64xf32>, vector<64x4xf32>, vector<1x4xf32> -> vector<1x4xf32>
    %c0_6 = arith.constant 0 : index
    %c0_7 = arith.constant 0 : index
    %6 = vector.load %arg3[%c0_6, %c0_7] : memref<1x4xf32, #tpu.memory_space<vmem>>, vector<1x4xf32>
    %7 = arith.addf %5, %6 : vector<1x4xf32>
    %cst_8 = arith.constant 0.000000e+00 : f32
    %8 = vector.broadcast %cst_8 : f32 to vector<1x4xf32>
    %9 = arith.cmpf oge, %7, %8 : vector<1x4xf32>
    %cst_9 = arith.constant 0.00999999977 : f32
    %10 = vector.broadcast %cst_9 : f32 to vector<1x4xf32>
    %11 = arith.mulf %10, %7 : vector<1x4xf32>
    %12 = arith.select %9, %7, %11 : vector<1x4xi1>, vector<1x4xf32>
    %c0_10 = arith.constant 0 : index
    %c0_11 = arith.constant 0 : index
    %13 = vector.load %arg4[%c0_10, %c0_11] : memref<4x64xf32, #tpu.memory_space<vmem>>, vector<4x64xf32>
    %cst_12 = arith.constant dense<0.000000e+00> : vector<1x64xf32>
    %14 = tpu.matmul %12, %13, %cst_12 {dimension_numbers = #tpu.dot_dimension_numbers<[1], [0], [0], [1], [0, 0, 1, 1], [], []>} : vector<1x4xf32>, vector<4x64xf32>, vector<1x64xf32> -> vector<1x64xf32>
    %c0_13 = arith.constant 0 : index
    %c0_14 = arith.constant 0 : index
    %15 = vector.load %arg5[%c0_13, %c0_14] : memref<1x64xf32, #tpu.memory_space<vmem>>, vector<1x64xf32>
    %16 = arith.addf %14, %15 : vector<1x64xf32>
    %17 = arith.negf %16 : vector<1x64xf32>
    %18 = math.exp %17 : vector<1x64xf32>
    %cst_15 = arith.constant 1.000000e+00 : f32
    %19 = vector.broadcast %cst_15 : f32 to vector<1x64xf32>
    %20 = arith.addf %19, %18 : vector<1x64xf32>
    %21 = arith.divf %19, %20 : vector<1x64xf32>
    %22 = vector.shape_cast %21 : vector<1x64xf32> to vector<1x64x1xf32>
    %23 = vector.broadcast %22 : vector<1x64x1xf32> to vector<1x64x256xf32>
    %24 = arith.mulf %0, %23 : vector<1x64x256xf32>
    %c0_16 = arith.constant 0 : index
    %c0_17 = arith.constant 0 : index
    %c0_18 = arith.constant 0 : index
    %25 = vector.load %arg6[%c0_16, %c0_17, %c0_18] : memref<1x64x256xf32, #tpu.memory_space<vmem>>, vector<1x64x256xf32>
    tpu.vector_store %arg6[%c0_16, %c0_17, %c0_18], %24 {strides = array<i32>} : memref<1x64x256xf32, #tpu.memory_space<vmem>>, vector<1x64x256xf32>,
    return
  }
  func.func @transform_0(%arg0: i32) -> (i32, i32, i32) {
    %c0_i32 = arith.constant 0 : i32
    %c0_i32_0 = arith.constant 0 : i32
    %c0_i32_1 = arith.constant 0 : i32
    return %arg0, %c0_i32, %c0_i32_0 : i32, i32, i32
  }
  func.func @transform_1(%arg0: i32) -> (i32, i32) {
    %c0_i32 = arith.constant 0 : i32
    %c0_i32_0 = arith.constant 0 : i32
    %c0_i32_1 = arith.constant 0 : i32
    return %c0_i32, %c0_i32_0 : i32, i32
  }
  func.func @transform_2(%arg0: i32) -> (i32, i32) {
    %c0_i32 = arith.constant 0 : i32
    %c0_i32_0 = arith.constant 0 : i32
    %c0_i32_1 = arith.constant 0 : i32
    return %c0_i32, %c0_i32_0 : i32, i32
  }
  func.func @transform_3(%arg0: i32) -> (i32, i32) {
    %c0_i32 = arith.constant 0 : i32
    %c0_i32_0 = arith.constant 0 : i32
    %c0_i32_1 = arith.constant 0 : i32
    return %c0_i32, %c0_i32_0 : i32, i32
  }
  func.func @transform_4(%arg0: i32) -> (i32, i32) {
    %c0_i32 = arith.constant 0 : i32
    %c0_i32_0 = arith.constant 0 : i32
    %c0_i32_1 = arith.constant 0 : i32
    return %c0_i32, %c0_i32_0 : i32, i32
  }
  func.func @transform_5(%arg0: i32) -> (i32, i32, i32) {
    %c0_i32 = arith.constant 0 : i32
    %c0_i32_0 = arith.constant 0 : i32
    %c0_i32_1 = arith.constant 0 : i32
    return %arg0, %c0_i32, %c0_i32_0 : i32, i32, i32
  }
}

</mosaic_0001>

<bundles_post_ra>
// kernel: tpu_custom_call.1
= control target key start
LH: loop header
LB: loop body
LE: loop exit
PB: predicated region body
PF: predicated region fallthrough
CT: control target
= control target key end

     0   :  { %10 = vsyncpa [#allocation3], 0  ;;  %s1048_s0 = inlined_call_operand.hbm [shape: f32[2,64,256], index: 0, kind: input, shape index: {}]   ;;  %s1049_s1 = inlined_call_operand.vmem [shape: f32[64,4], index: 1, kind: input, shape index: {}]   ;;  %s1050_s2 = inlined_call_operand.vmem [shape: f32[1,4], index: 2, kind: input, shape index: {}]   ;;  %s1051_s3 = inlined_call_operand.vmem [shape: f32[4,64], index: 3, kind: input, shape index: {}]   ;;  %s1052_s4 = inlined_call_operand.vmem [shape: f32[1,64], index: 4, kind: input, shape index: {}]   ;;  %s1053_s5 = inlined_call_operand.hbm [shape: f32[2,64,256], index: 5, kind: output, shape index: {}]  }
   0x1   :  { %12 = vsyncpa [#allocation3 + $0x1], 0 }
   0x2   :  { %13 = vsyncpa [#allocation4], 0 }
   0x3   :  { %15 = vsyncpa [#allocation4 + $0x1], 0  ;;  %s801_s18 = smov 0   ;;  %s803_s19 = smov 0  }
   0x4   :  { %s805_s20 = smov 0   ;;  %s807_s21 = smov 0  }
   0x5 LB: > { %s822_s22 = sadd.s32 4294967295, %s765_s21   ;;  %s586_s23 = sadd.s32 4294967294, %s765_s21   ;;  %s765_s21 = sphi %s807_s21, %s1063_s21   ;;  %s761_s20 = sphi %s805_s20, %s1062_s20   ;;  %s757_s19 = sphi %s803_s19, %s1061_s19   ;;  %s753_s18 = sphi %s801_s18, %s1060_s18  }
   0x6   : > { %s826_s24 = sadd.s32 1, %s765_s21   ;;  %s28_s25 = sadd.s32 1, %s761_s20 }
   0x7   : > { %s25_s26 = ssub.s32 %s765_s21, %s826_s24  ;;  %p35_p0 = scmp.ne.s32.totalorder %s761_s20, %s757_s19 }
   0x8   : > { %p26_p1 = scmp.eq.s32.totalorder %s25_s26, 0  ;;  %p36_p2 = scmp.eq.s32.totalorder %s765_s21, 0 }
   0x9   : > { %p41_p3 = scmp.ne.s32.totalorder %s757_s19, %s753_s18  ;;  %p42_p4 = scmp.eq.s32.totalorder %s822_s22, 0 }
   0xa   : > { %s838_s27 = scalar_select %p26_p1, %s761_s20, %s28_s25  }
   0xb   : > { %p840_p5 = por %p36_p2, %p35_p0  ;;  %p844_p6 = por %p42_p4, %p41_p3 }
   0xc   : > { %p149_p7 = scmp.eq.s32.totalorder %s822_s22, 1  ;;  %p155_p8 = scmp.eq.s32.totalorder %s586_s23, 1 }
   0xd   : > { %p618_p10 = scmp.lt.s32.totalorder %s765_s21, 2  ;;  %s187_s7 = sand.u32 1, %s761_s20  }
   0xe   : > { %p851_p11 = por %p149_p7, %p35_p0  ;;  %p855_p12 = por %p155_p8, %p41_p3 }
   0xf   : > { %s604_s8 = sshll.u32 %s765_s21, 7  ;;  %s589_s9 = sshll.u32 %s187_s7, 7 }
  0x10   : > { %s196_s12 = scalar_lea.hbm %s1048_s0, %s604_s8  ;;  %s191_s14 = scalar_lea.vmem [#allocation2], %s589_s9 }
  0x11   : > { %s197_s13 = sshll.u32 %s196_s12, 4  ;;  %s199_s15 = sshll.u32 %s191_s14, 4  ;;  %s198_s13 = int_to_ptr.hbm [resolvable:$true] %s197_s13  ;;  %s200_s15 = int_to_ptr.vmem [resolvable:$true] %s199_s15 }
  0x12   : > { %p866_p13 = pnand %p618_p10, %p840_p5  ;;  %p592_p0 = scmp.ge.s32.totalorder %s765_s21, 1 }
  0x13   : > { %p207_p1 = scmp.lt.s32.totalorder %s765_s21, 3  ;;  %s188_s17 = scalar_lea.sflag [#allocation3], %s187_s7 }
  0x14   : > { %s669_s23 = sshra.s32 %s198_s13, 4  ;;  %p673_p3 = pneg %p866_p13  ;;  %s670_s23 = int_to_ptr.hbm [resolvable:$true] %s669_s23 }
  0x15   : > { %s671_s25 = scalar_lea.hbm %s670_s23, 128  ;;  %s676_s28 = scalar_lea.hbm %s1048_s0, 256 }
  0x16   : > { %p672_p2 = scmp.ne.s32.totalorder %s670_s23, %s671_s25  ;;  %p677_p5 = scmp.lt.s32.totalorder %s670_s23, %s1048_s0 }
  0x17   : > { %p678_p8 = scmp.lt.s32.totalorder %s676_s28, %s671_s25 }
  0x18   : > { %p674_p4 = pnand %p673_p3, %p672_p2 }
  0x19   : > { %p679_p10 = por %p678_p8, %p677_p5 }
  0x1a   : > { %p675_p7 = pneg %p674_p4 }
  0x1c   : > { %p680_p9 = pnand %p679_p10, %p675_p7 }
  0x1e   : > { %683 = shalt.err (!%p680_p9)
}
  0x1f   : > { %s767_s7 = smov 256   ;;  %s768_s11 = smov 16  }
  0x20   : > { %613 = dma.hbm_to_vmem [thread:$0]  (!%p866_p13), %s198_s13, 2048, %s200_s15, %s188_s17, %s767_s7, %s767_s7, %s768_s11  }
  0x21   : > { %p208_p2 = pnand %p592_p0, %p207_p1 }
  0x22   : > { %s887_s12 = sand.u32 (!%p208_p2), 1, %s757_s19  }
  0x23   : > { %211 = sbr.rel (%p208_p2) target bundleno = 625 (0x271), region = 40  ;;  %s593_s14 = sshll.u32 (!%p208_p2), %s887_s12, 7 }
  0x24   : > { %s214_s23 = scalar_lea.sflag (!%p208_p2), [#allocation3], %s887_s12  ;;  %s217_s25 = scalar_lea.vmem (!%p208_p2), [#allocation2], %s593_s14 }
  0x28   : > { %744 = dma.done.wait (%p844_p6), %s214_s23, 2048  }
  0x29   : > { %746 = vsyncadd (%p844_p6), %s214_s23, 4294965248  ;;  %v897_v0 = vld [vmem:[%s217_s25] sm:$0xff]  ;;  %v899_v1 = vld [vmem:[%s217_s25 + $0x8] sm:$0xff]  ;;  %v310_v32 = vlaneseq  ;;  %vm315_vm0 = vcmask 130112   ;;  %vm319_vm1 = vcmask 195712   ;;  %vm323_vm2 = vcmask 261312  }
  0x2a   : > { %v901_v2 = vld [vmem:[%s217_s25 + $0x20] sm:$0xff]  ;;  %v261_v3 = vadd.f32 %v899_v1, %v897_v0  ;;  %v905_v4 = vld [vmem:[%s217_s25 + $0x28] sm:$0xff]  ;;  %v915_v9 = vld [vmem:[%s217_s25 + $0x10] sm:$0xff]  ;;  %vm327_vm3 = vcmask 326912   ;;  %vm331_vm4 = vcmask 392512   ;;  %vm335_vm5 = vcmask 458112  }
  0x2b   : > { %v907_v5 = vld [vmem:[%s217_s25 + $0x40] sm:$0xff]  ;;  %v909_v6 = vld [vmem:[%s217_s25 + $0x48] sm:$0xff]  ;;  %v267_v7 = vadd.f32 %v905_v4, %v901_v2  ;;  %v917_v10 = vld [vmem:[%s217_s25 + $0x18] sm:$0xff]  ;;  %v311_v36 = vand.u32 127, %v310_v32  ;;  %vm339_vm6 = vcmask 523712   ;;  %vm341_vm7 = vcmask 523264  }
  0x2c   : > { %v273_v8 = vadd.f32 %v909_v6, %v907_v5  ;;  %262 = vadd.xlane.f32.xlu0 %v261_v3  ;;  %v919_v11 = vld [vmem:[%s217_s25 + $0x30] sm:$0xff]  ;;  %v921_v12 = vld [vmem:[%s217_s25 + $0x38] sm:$0xff]  ;;  %v264_v15 = vadd.f32 %v917_v10, %v915_v9  ;;  %v933_v18 = vld [vmem:[%s217_s25 + $0x60] sm:$0xff]  ;;  %vm373_vm8 = vcmask 1043456   ;;  %vm369_vm10 = vcmask 31744   ;;  %s982_s9 = scalar_lea.vmem [#allocation5], %s593_s14 }
  0x2d   : > { %268 = vadd.xlane.f32.xlu1 %v267_v7  ;;  %v923_v13 = vld [vmem:[%s217_s25 + $0x50] sm:$0xff]  ;;  %v925_v14 = vld [vmem:[%s217_s25 + $0x58] sm:$0xff]  ;;  %v270_v16 = vadd.f32 %v921_v12, %v919_v11  ;;  %v935_v19 = vld [vmem:[%s217_s25 + $0x68] sm:$0xff]  ;;  %v313_v38 = vadd.s32 4294967288, %v311_v36  ;;  %v317_v39 = vadd.s32 4294967280, %v311_v36  ;;  %v321_v42 = vadd.s32 4294967272, %v311_v36 }
  0x2e   : > { %274 = vadd.xlane.f32.xlu2 %v273_v8  ;;  %v276_v17 = vadd.f32 %v925_v14, %v923_v13  ;;  %v937_v20 = vld [vmem:[%s217_s25 + $0x70] sm:$0xff]  ;;  %v939_v21 = vld [vmem:[%s217_s25 + $0x78] sm:$0xff]  ;;  %v279_v22 = vadd.f32 %v935_v19, %v933_v18  ;;  %v298_v26 = vld [vmem:[%s1049_s1 + $0x28] sm:$0xff]  ;;  %v325_v46 = vadd.s32 4294967264, %v311_v36  ;;  %v329_v53 = vadd.s32 4294967256, %v311_v36  ;;  %s605_s14 = sshll.u32 %s822_s22, 7 }
  0x2f   : > { %v282_v23 = vadd.f32 %v939_v21, %v937_v20  ;;  %v300_v24 = vld [vmem:[%s1049_s1 + $0x38] sm:$0xff]  ;;  %v299_v25 = vld [vmem:[%s1049_s1 + $0x30] sm:$0xff]  ;;  %v297_v27 = vld [vmem:[%s1049_s1 + $0x20] sm:$0xff]  ;;  %v333_v59 = vadd.s32 4294967248, %v311_v36  ;;  %v337_v62 = vadd.s32 4294967240, %v311_v36  ;;  %s509_s11 = scalar_lea.hbm %s1053_s5, %s605_s14  ;;  %s510_s23 = sshll.u32 %s982_s9, 4  ;;  %s511_s23 = int_to_ptr.vmem [resolvable:$true] %s510_s23 }
  0x30   : > { %352 = vmatpush.msra.mxu0 %v300_v24  ;;  %v296_v28 = vld [vmem:[%s1049_s1 + $0x18] sm:$0xff]  ;;  %v295_v29 = vld [vmem:[%s1049_s1 + $0x10] sm:$0xff]  ;;  %v294_v30 = vld [vmem:[%s1049_s1 + $0x8] sm:$0xff]  ;;  %s512_s25 = sshll.u32 %s509_s11, 4  ;;  %s498_s22 = scalar_lea.sflag [#allocation4], %s887_s12  ;;  %s513_s25 = int_to_ptr.hbm [resolvable:$true] %s512_s25 }
  0x31   : > { %v293_v31 = vld [vmem:[%s1049_s1] sm:$0xff]  ;;  %s713_s29 = sshra.s32 %s513_s25, 4  ;;  %s719_s17 = scalar_lea.hbm %s1053_s5, 256  ;;  %s714_s29 = int_to_ptr.hbm [resolvable:$true] %s713_s29 }
  0x32   : > { %353 = vmatpush.msra.mxu0 %v299_v25  ;;  %v367_v24 = vld [vmem:[%s1051_s3] sm:$0xf]  ;;  %s715_s13 = scalar_lea.hbm %s714_s29, 128  ;;  %p720_p0 = scmp.lt.s32.totalorder %s714_s29, %s1053_s5 }
  0x33   : > { %596 = vmatpush.msk.msra.mxu1 %vm373_vm8, %v367_v24  ;;  %v301_v25 = vld [vmem:[%s1050_s2] sm:$0x1]  ;;  %p716_p6 = scmp.ne.s32.totalorder %s714_s29, %s715_s13  ;;  %p721_p1 = scmp.lt.s32.totalorder %s719_s17, %s715_s13 }
  0x34   : > { %265 = vadd.xlane.f32.xlu0 %v264_v15  ;;  %354 = vmatpush.msra.mxu0 %v298_v26 }
  0x35   : > { %271 = vadd.xlane.f32.xlu1 %v270_v16  ;;  %p717_p9 = pnand %p716_p6, %p851_p11  ;;  %p722_p3 = por %p721_p1, %p720_p0 }
  0x36   : > { %277 = vadd.xlane.f32.xlu2 %v276_v17  ;;  %355 = vmatpush.msra.mxu0 %v297_v27 }
  0x37   : > { %p718_p13 = pneg %p717_p9 }
  0x38   : > { %356 = vmatpush.msra.mxu0 %v296_v28 }
  0x39   : > { %p723_p4 = pnand %p722_p3, %p718_p13 }
  0x3a   : > { %357 = vmatpush.msra.mxu0 %v295_v29 }
  0x3c   : > { %280 = vadd.xlane.f32.xlu0 %v279_v22  ;;  %358 = vmatpush.msra.mxu0 %v294_v30  ;;  %v418_v30 = vshrl.u32 %v310_v32, 7 }
  0x3d   : > { %283 = vadd.xlane.f32.xlu1 %v282_v23 }
  0x3e   : > { %359 = vmatpush.msra.mxu0 %v293_v31  ;;  %656 = vset.pattern.permute.xlu2 %v418_v30  ;;  %v431_v31 = vadd.s32 16, %v418_v30 }
  0x40   : > { %658 = vset.pattern.permute.xlu1 %v431_v31 }
  0x9f   : > { %v263_v33 = vpop.xlane.xlu0 %262 }
  0xa0   : > { %v269_v34 = vpop.xlane.xlu1 %268  ;;  %v285_v37 = vmul.f32 0.00390625, %v263_v33  ;;  %v425_v33 = vadd.s32 8, %v418_v30 }
  0xa1   : > { %v275_v35 = vpop.xlane.xlu2 %274  ;;  %v287_v40 = vmul.f32 0.00390625, %v269_v34  ;;  %v368_v34 = vld [vmem:[%s1052_s4] sm:$0x1] }
  0xa2   : > { %v312_v48 = vperm.slane %v285_v37, %v311_v36  ;;  %v289_v49 = vmul.f32 0.00390625, %v275_v35  ;;  %657 = vset.pattern.permute.xlu0 %v425_v33 }
  0xa3   : > { %v318_v51 = vperm.slane %v287_v40, %v317_v39 }
  0xa4   : > { %v326_v57 = vperm.slane %v289_v49, %v325_v46 }
  0xa7   : > { %v266_v41 = vpop.xlane.xlu0 %265 }
  0xa8   : > { %v286_v43 = vmul.f32 0.00390625, %v266_v41  ;;  %v272_v44 = vpop.xlane.xlu1 %271 }
  0xa9   : > { %v278_v45 = vpop.xlane.xlu2 %277  ;;  %v288_v47 = vmul.f32 0.00390625, %v272_v44 }
  0xaa   : > { %v314_v50 = vperm.slane %v286_v43, %v313_v38  ;;  %v290_v54 = vmul.f32 0.00390625, %v278_v45 }
  0xab   : > { %v322_v52 = vperm.slane %v288_v47, %v321_v42 }
  0xac   : > { %v316_v55 = vsel %vm315_vm0, %v314_v50, %v312_v48  ;;  %v330_v60 = vperm.slane %v290_v54, %v329_v53  ;;  %v449_v50 = vadd.s32 40, %v418_v30  ;;  %v443_v53 = vadd.s32 32, %v418_v30 }
  0xad   : > { %v320_v56 = vsel %vm319_vm1, %v318_v51, %v316_v55  ;;  %v437_v51 = vadd.s32 24, %v418_v30  ;;  %v455_v54 = vadd.s32 48, %v418_v30 }
  0xae   : > { %v324_v58 = vsel %vm323_vm2, %v322_v52, %v320_v56  ;;  %v461_v52 = vadd.s32 56, %v418_v30 }
  0xaf   : > { %v281_v61 = vpop.xlane.xlu0 %280  ;;  %v328_v7 = vsel %vm327_vm3, %v326_v57, %v324_v58 }
  0xb0   : > { %v291_v63 = vmul.f32 0.00390625, %v281_v61  ;;  %v284_v3 = vpop.xlane.xlu1 %283  ;;  %v332_v17 = vsel %vm331_vm4, %v330_v60, %v328_v7 }
  0xb1   : > { %v292_v8 = vmul.f32 0.00390625, %v284_v3 }
  0xb2   : > { %v334_v15 = vperm.slane %v291_v63, %v333_v59 }
  0xb3   : > { %v338_v16 = vperm.slane %v292_v8, %v337_v62 }
  0xb4   : > { %v336_v22 = vsel %vm335_vm5, %v334_v15, %v332_v17 }
  0xb5   : > { %v340_v23 = vsel %vm339_vm6, %v338_v16, %v336_v22 }
  0xb6   : > { %595 = vmatmul.msk.f32.vlgmr.msra.gmra.mxu0 %vm341_vm7, %v340_v23 }
 0x133   : > { %v361_v26 = vpop.f32.mrf.mxu0 }
 0x134   : > { %v362_v27 = vadd.f32 %v361_v26, %v301_v25 }
 0x136   : > { %v365_v28 = vmul.f32 0.01, %v362_v27  ;;  %vm364_vm9 = vcmp.ge.f32.partialorder %v362_v27, 0.0 }
 0x138   : > { %v366_v29 = vsel %vm364_vm9, %v362_v27, %v365_v28 }
 0x139   : > { %597 = vmatmul.msk.f32.vlgmr.msra.gmra.mxu1 %vm369_vm10, %v366_v29 }
 0x1b6   : > { %v394_v35 = vpop.f32.mrf.mxu1 }
 0x1b7   : > { %v395_v36 = vadd.f32 %v394_v35, %v368_v34 }
 0x1b9   : > { %v598_v37 = vmul.f32 -1.442695, %v395_v36 }
 0x1bb   : > { %665 = vpow2.f32 %v598_v37 }
 0x1c1   : > { %v666_v38 = vpop.eup %665 }
 0x1c2   : > { %v400_v39 = vadd.f32 1.0, %v666_v38 }
 0x1c4   : > { %667 = vrcp.f32 %v400_v39  ;;  %v412_v32 = vand.u32 2147483648, %v400_v39  ;;  %v410_v44 = vand.u32 2147483647, %v400_v39  ;;  %vm406_vm12 = vweird.f32 %v400_v39 }
 0x1c6   : > { %v413_v46 = vor.u32 1.1754944e-38, %v412_v32  ;;  %vm411_vm14 = vcmp.eq.f32.partialorder %v410_v44, 8.507059e+37 }
 0x1ca   : > { %v668_v40 = vpop.eup %667 }
 0x1cb   : > { %v402_v41 = vmul.f32 %v668_v40, %v400_v39  ;;  %vm407_vm11 = vweird.f32 %v668_v40 }
 0x1cc   : > { %vm408_vm13 = vmor %vm406_vm12, %vm407_vm11 }
 0x1cd   : > { %v403_v42 = vsub.f32 1.0, %v402_v41 }
 0x1cf   : > { %v404_v43 = vmul.f32 %v668_v40, %v403_v42 }
 0x1d1   : > { %v405_v45 = vadd.f32 %v668_v40, %v404_v43 }
 0x1d3   : > { %v409_v47 = vsel %vm408_vm13, %v668_v40, %v405_v45 }
 0x1d4   : > { %v414_v48 = vsel %vm411_vm14, %v413_v46, %v409_v47 }
 0x1d5   : > { %v416_v49 = vperm.slane %v414_v48, 0 }
 0x1d7   : > { %433 = vperm.xlu1 %658, %v416_v49   ;;  %427 = vperm.xlu0 %657, %v416_v49  }
 0x1d8   : > { %421 = vperm.xlu2 %656, %v416_v49  }
 0x1df   : > { %661 = vset.pattern.permute.xlu1 %v449_v50  ;;  %664 = vset.pattern.permute.xlu0 %v461_v52 }
 0x1e0   : > { %659 = vset.pattern.permute.xlu2 %v437_v51 }
 0x1e7   : > { %451 = vperm.xlu1 %661, %v416_v49  }
 0x1e8   : > { %439 = vperm.xlu2 %659, %v416_v49  }
 0x1ef   : > { %663 = vset.pattern.permute.xlu1 %v461_v52 }
 0x1f0   : > { %660 = vset.pattern.permute.xlu2 %v443_v53 }
 0x1f7   : > { %463 = vperm.xlu1 %663, %v416_v49  }
 0x1f8   : > { %445 = vperm.xlu2 %660, %v416_v49  }
 0x200   : > { %662 = vset.pattern.permute.xlu2 %v455_v54 }
 0x208   : > { %457 = vperm.xlu2 %662, %v416_v49  }
 0x232   : > { %v422_v55 = vpop.permute.xlu2 %421 }
 0x233   : > { %v465_v56 = vmul.f32 %v422_v55, %v897_v0  ;;  %v466_v57 = vmul.f32 %v422_v55, %v899_v1 }
 0x235   : > { %481 = vst [vmem:[%s982_s9] sm:$0xff] %v465_v56 }
 0x236   : > { %482 = vst [vmem:[%s982_s9 + $0x8] sm:$0xff] %v466_v57 }
 0x242   : > { %v440_v58 = vpop.permute.xlu2 %439 }
 0x243   : > { %v471_v59 = vmul.f32 %v440_v58, %v919_v11  ;;  %v472_v0 = vmul.f32 %v440_v58, %v921_v12 }
 0x245   : > { %487 = vst [vmem:[%s982_s9 + $0x30] sm:$0xff] %v471_v59 }
 0x246   : > { %488 = vst [vmem:[%s982_s9 + $0x38] sm:$0xff] %v472_v0 }
 0x249   : > { %v434_v1 = vpop.permute.xlu1 %433  ;;  %v428_v60 = vpop.permute.xlu0 %427 }
 0x24a   : > { %v469_v61 = vmul.f32 %v434_v1, %v901_v2  ;;  %v470_v62 = vmul.f32 %v434_v1, %v905_v4  ;;  %v467_v63 = vmul.f32 %v428_v60, %v915_v9  ;;  %v468_v3 = vmul.f32 %v428_v60, %v917_v10 }
 0x24c   : > { %485 = vst [vmem:[%s982_s9 + $0x20] sm:$0xff] %v469_v61 }
 0x24d   : > { %486 = vst [vmem:[%s982_s9 + $0x28] sm:$0xff] %v470_v62 }
 0x24e   : > { %483 = vst [vmem:[%s982_s9 + $0x10] sm:$0xff] %v467_v63 }
 0x24f   : > { %484 = vst [vmem:[%s982_s9 + $0x18] sm:$0xff] %v468_v3 }
 0x252   : > { %v446_v11 = vpop.permute.xlu2 %445 }
 0x253   : > { %v473_v12 = vmul.f32 %v446_v11, %v907_v5  ;;  %v474_v2 = vmul.f32 %v446_v11, %v909_v6 }
 0x255   : > { %489 = vst [vmem:[%s982_s9 + $0x40] sm:$0xff] %v473_v12 }
 0x256   : > { %490 = vst [vmem:[%s982_s9 + $0x48] sm:$0xff] %v474_v2 }
 0x259   : > { %v452_v4 = vpop.permute.xlu1 %451 }
 0x25a   : > { %v475_v9 = vmul.f32 %v452_v4, %v923_v13  ;;  %v476_v7 = vmul.f32 %v452_v4, %v925_v14 }
 0x25c   : > { %491 = vst [vmem:[%s982_s9 + $0x50] sm:$0xff] %v475_v9 }
 0x25d   : > { %492 = vst [vmem:[%s982_s9 + $0x58] sm:$0xff] %v476_v7 }
 0x262   : > { %v458_v10 = vpop.permute.xlu2 %457 }
 0x263   : > { %v477_v8 = vmul.f32 %v458_v10, %v933_v18  ;;  %v478_v5 = vmul.f32 %v458_v10, %v935_v19 }
 0x265   : > { %493 = vst [vmem:[%s982_s9 + $0x60] sm:$0xff] %v477_v8 }
 0x266   : > { %494 = vst [vmem:[%s982_s9 + $0x68] sm:$0xff] %v478_v5 }
 0x269   : > { %v464_v6 = vpop.permute.xlu1 %463 }
 0x26a   : > { %v479_v13 = vmul.f32 %v464_v6, %v937_v20  ;;  %v480_v14 = vmul.f32 %v464_v6, %v939_v21 }
 0x26c   : > { %495 = vst [vmem:[%s982_s9 + $0x70] sm:$0xff] %v479_v13 }
 0x26d   : > { %496 = vst [vmem:[%s982_s9 + $0x78] sm:$0xff] %v480_v14 }
 0x26e   : > { %726 = shalt.err (!%p723_p4)
}
 0x26f   : > { %s769_s12 = smov 256   ;;  %s770_s28 = smov 16  }
 0x270   : > { %608 = dma.vmem_to_hbm [thread:$0]  (%p851_p11), %s511_s23, 2048, %s513_s25, %s498_s22, %s769_s12, %s769_s12, %s770_s28  }
 0x271 PF: > { %s527_s9 = sand.u32 1, %s753_s18   ;;  %p1059_p7 = scmp.ge.s32.totalorder %s765_s21, 2 }
 0x272   : > { %s528_s14 = scalar_lea.sflag [#allocation4], %s527_s9 }
 0x273   : > { %p615_p5 = pnand %p1059_p7, %p855_p12 }
 0x275   : > { %p616_p8 = pneg %p615_p5 }
 0x277   : > { %748 = dma.done.wait (%p616_p8), %s528_s14, 2048  }
 0x278   : > { %750 = vsyncadd (%p616_p8), %s528_s14, 4294965248  ;;  %p18_p10 = scmp.ge.s32.totalorder %s826_s24, 4   ;;  %s1060_s18 = smov %s757_s19 }
 0x279   : > { %s1061_s19 = smov %s761_s20  ;;  %s1062_s20 = smov %s838_s27 }
 0x27a   : > { %s1063_s21 = smov %s826_s24  ;;  %20 = sbr.rel (!%p18_p10) target bundleno = 5 (0x5), region = 85 }
 0x27f   :  { %534 = vsyncpa [#allocation3], 1 }
 0x280   :  { %536 = vsyncpa [#allocation3 + $0x1], 1 }
 0x281   :  { %537 = vsyncpa [#allocation4], 1 }
 0x282   :  { %539 = vsyncpa [#allocation4 + $0x1], 1 }

</bundles_post_ra>
